<compile_context>
chip_gen: v6e
topology: v6e:2x2x1
jax: 0.10.0
libtpu: 0.0.40
codegen_flags: <defaults>
</compile_context>

<pallas_src>
import numpy as np
import jax
import jax.numpy as jnp
from jax.experimental import pallas as pl
from jax.experimental.pallas import tpu as pltpu

BN_EPS = 1e-3        # scVI FCLayers: BatchNorm1d(momentum=.01, eps=.001)
ZINB_EPS = 1e-8
OUT_W = 128          # lane-dense slab width for per-row vectors / outputs
HEAD_W = 128         # lane-padded width of the fused encoder head matmul
_NEG_BIG = -1e30     # softmax bias for padded gene columns
_HALF_LOG_2PI = 0.9189385332046727


# ------------------------------ small helpers --------------------------------

def _recip_newton(d):
    """1/d: EUP approx reciprocal + one Newton step (~2^-24 rel error)."""
    r = pl.reciprocal(d, approx=True)
    return r * (2.0 - d * r)


def _softplus(x):
    return jnp.maximum(x, 0.0) + jnp.log(1.0 + jnp.exp(-jnp.abs(x)))


def _lgamma_pos(z):
    """lgamma(z) for z > 0.

    Stirling series (3 correction terms) for z >= 8; for z < 8 evaluate at
    z + 8 and subtract log of the Pochhammer product z(z+1)...(z+7).
    No f32 overflow for large z and cheaper on VALU/EUP than a deg-8 Lanczos.
    """
    small = z < 8.0
    w = jnp.where(small, z + 8.0, z)
    r = _recip_newton(w)
    r2 = r * r
    series = r * (1.0 / 12.0 - r2 * (1.0 / 360.0 - r2 * (1.0 / 1260.0)))
    stir = (w - 0.5) * jnp.log(w) - w + _HALF_LOG_2PI + series
    zc = jnp.minimum(z, 8.0)               # keep the (unselected) product finite
    prod = zc
    for i in range(1, 8):
        prod = prod * (zc + float(i))
    corr = jnp.where(small, jnp.log(prod), 0.0)
    return stir - corr


def _bn_relu(h, gamma, beta, n_valid):
    """BatchNorm1d (training-mode batch stats, biased var, two-pass centered)
    + ReLU, with statistics over the first `n_valid` rows only (rest are pad)."""
    n_rows = h.shape[0]
    if n_valid == n_rows:
        mean = jnp.mean(h, axis=0, keepdims=True)
        d = h - mean
        var = jnp.mean(d * d, axis=0, keepdims=True)
    else:
        rowmask = (jax.lax.broadcasted_iota(jnp.int32, (n_rows, 1), 0)
                   < n_valid).astype(h.dtype)
        inv_n = 1.0 / float(n_valid)
        mean = jnp.sum(h * rowmask, axis=0, keepdims=True) * inv_n
        d = (h - mean) * rowmask
        var = jnp.sum(d * d, axis=0, keepdims=True) * inv_n
    y = gamma * (h - mean) * jax.lax.rsqrt(var + BN_EPS) + beta
    return jnp.maximum(y, 0.0)


def _gene_tile(g):
    # 512-wide lane-dense gene tiles at realistic G (>= ~85% HBM roofline);
    # 128 at small G so the toy test still exercises the multi-step pipeline.
    return 128 if g <= 1024 else 512


def _vmem_limit(resident_bytes, per_step_bytes):
    # double-buffered tiles + headroom; clamp so the limit is meaningful on
    # v5e (16 MiB scoped default) and safe inside v7x's 64 MiB/TC physical VMEM.
    need = resident_bytes + 2 * per_step_bytes
    return int(min(max(int(1.25 * need) + (4 << 20), 32 << 20), 56 << 20))


# ----------------------------- parameter packing -----------------------------

def pack_params(params, n_hidden, n_latent):
    """Fuse/concatenate the 25 raw scVI parameter tensors into packed inputs."""
    (zW0, zb0, zg0, zbe0, zWm, zbm, zWv, zbv,
     lW0, lb0, lg0, lbe0, lWm, lbm, lWv, lbv,
     dW0, db0, dg0, dbe0, dWs, dbs, dWd, dbd, pxr) = params
    H, L = n_hidden, n_latent
    G = zW0.shape[0]
    assert 2 * L + 2 <= HEAD_W <= 2 * H and L + 3 <= OUT_W

    GT = _gene_tile(G)
    G_pad = ((G + GT - 1) // GT) * GT
    bf16 = jnp.bfloat16

    padr = lambda a: jnp.pad(a, ((0, G_pad - G), (0, 0)))               # gene rows
    padc = lambda a, v=0.0: jnp.pad(a, ((0, 0), (0, G_pad - G)),
                                    constant_values=v)                  # gene cols

    # fused z/l encoder first layer (G_pad, 2H); padded gene rows contribute 0
    W_enc = padr(jnp.concatenate([zW0, lW0], axis=1)).astype(bf16)
    # fused block-diagonal mean/var heads, lane-padded to 128 columns
    top = jnp.concatenate([zWm, zWv, jnp.zeros((H, 2), jnp.float32)], axis=1)
    bot = jnp.concatenate([jnp.zeros((H, 2 * L), jnp.float32), lWm, lWv], axis=1)
    W_heads = jnp.concatenate([top, bot], axis=0)                       # (2H, 2L+2)
    W_heads = jnp.pad(W_heads, ((0, 0), (0, HEAD_W - (2 * L + 2)))).astype(bf16)
    W_dec0 = dW0.astype(bf16)                                           # (L, H)
    W_ds = padc(dWs).astype(bf16)                                       # (H, G_pad)
    W_dd = padc(dWd).astype(bf16)                                       # (H, G_pad)

    SW = 2 * H
    pad_to = lambda v: jnp.pad(v, ((0, 0), (0, SW - v.shape[1])))
    small = jnp.concatenate([
        pad_to(jnp.concatenate([zb0, lb0], axis=1)),                    # 0: enc biases
        pad_to(jnp.concatenate([zg0, lg0], axis=1)),                    # 1: enc BN gamma
        pad_to(jnp.concatenate([zbe0, lbe0], axis=1)),                  # 2: enc BN beta
        pad_to(jnp.concatenate([zbm, zbv, lbm, lbv], axis=1)),          # 3: head biases
        pad_to(db0), pad_to(dg0), pad_to(dbe0),                         # 4-6: dec FC
    ], axis=0).astype(jnp.float32)                                      # (7, 2H)

    theta = jnp.exp(pxr)                                                # (1, G)
    gene = jnp.concatenate([
        padc(dbs, _NEG_BIG),                        # 0: scale bias (pad -> -inf-ish)
        padc(dbd, 0.0),                             # 1: dropout bias
        padc(theta, 1.0),                           # 2: theta = exp(px_r)
        padc(jnp.log(theta + ZINB_EPS), 0.0),       # 3: log(theta+eps)
        padc(jax.scipy.special.gammaln(theta), 0.0),  # 4: lgamma(theta)
        padc(jnp.ones((1, G), jnp.float32), 0.0),   # 5: gene validity mask
    ], axis=0).astype(jnp.float32)                                      # (6, G_pad)

    return dict(W_enc=W_enc, W_heads=W_heads, W_dec0=W_dec0, W_ds=W_ds,
                W_dd=W_dd, small=small, gene=gene,
                G=G, G_pad=G_pad, GT=GT, H=H, L=L)


# --------------------------------- wrapper -----------------------------------

def vae_forward(x, local_l_mean, local_l_var, eps_z, eps_l, packed):
    B, G = x.shape
    H, L = packed["H"], packed["L"]
    GT, G_pad = packed["GT"], packed["G_pad"]
    assert G == packed["G"]

    BP = ((B + 15) // 16) * 16            # bf16 sublane tile = 16 rows
    nk = G_pad // GT
    TWO_H = 2 * H
    bf16, f32 = jnp.bfloat16, jnp.float32
    n_valid = B

    # pad batch & gene axes (pad rows masked out of BN stats and sliced off;
    # pad gene columns masked out of softmax/reconst inside the kernel)
    xp = jnp.pad(x, ((0, BP - B), (0, G_pad - G)))
    lgx1 = jax.scipy.special.gammaln(xp + 1.0)          # lgamma(x+1), hoisted
    # aux slab layout: [0:L] eps_z, [L] eps_l, [L+1] local_l_mean, [L+2] local_l_var
    aux = jnp.concatenate([eps_z, eps_l, local_l_mean, local_l_var], axis=1)
    aux = jnp.pad(aux, ((0, BP - B), (0, 0)), constant_values=1.0)
    aux = jnp.pad(aux, ((0, 0), (0, OUT_W - aux.shape[1])))

    # =============== call 1: encoders — gene K-reduction grid =================
    def enc_kernel(x_ref, wenc_ref, wheads_ref, aux_ref, sv_ref, out_ref, acc_ref):
        k = pl.program_id(0)

        @pl.when(k == 0)
        def _():
            acc_ref[...] = jnp.zeros_like(acc_ref)

        xl = jnp.log(1.0 + x_ref[...])                  # log_variational
        acc_ref[...] += jnp.dot(xl.astype(bf16), wenc_ref[...],
                                preferred_element_type=f32)

        @pl.when(k == pl.num_programs(0) - 1)
        def _():
            # fused z/l encoder FC (BN is per-column, so the concatenated
            # layout is exactly the two independent encoders)
            h2 = acc_ref[...] + sv_ref[0:1, :]
            h2 = _bn_relu(h2, sv_ref[1:2, :], sv_ref[2:3, :], n_valid)
            # fused, lane-padded mean/var heads (block-diagonal weights)
            heads = jnp.dot(h2.astype(bf16), wheads_ref[...],
                            preferred_element_type=f32)
            heads = heads + sv_ref[3:4, 0:HEAD_W]
            qz_m = heads[:, 0:L]
            qz_v = jnp.exp(heads[:, L:2 * L])
            ql_m = heads[:, 2 * L:2 * L + 1]
            ql_v = jnp.exp(heads[:, 2 * L + 1:2 * L + 2])

            eps_z_ = aux_ref[:, 0:L]
            eps_l_ = aux_ref[:, L:L + 1]
            llm = aux_ref[:, L + 1:L + 2]
            llv = aux_ref[:, L + 2:L + 3]

            z = qz_m + jnp.sqrt(qz_v) * eps_z_
            library = ql_m + jnp.sqrt(ql_v) * eps_l_

            kl_z = 0.5 * jnp.sum(qz_v + qz_m * qz_m - 1.0 - jnp.log(qz_v),
                                 axis=-1, keepdims=True)
            kl_l = (0.5 * (jnp.log(llv) - jnp.log(ql_v))
                    + (ql_v + (ql_m - llm) ** 2) * _recip_newton(2.0 * llv)
                    - 0.5)

            # output slab layout: [0:L] z, [L] library, [L+1] kl_z, [L+2] kl_l
            out_ref[...] = jnp.zeros(out_ref.shape, f32)
            out_ref[:, 0:L] = z
            out_ref[:, L:L + 1] = library
            out_ref[:, L + 1:L + 2] = kl_z
            out_ref[:, L + 2:L + 3] = kl_l

    enc_args = (xp, packed["W_enc"], packed["W_heads"], aux, packed["small"])
    enc_resident = (packed["W_heads"].size * 2 + aux.size * 4
                    + packed["small"].size * 4 + BP * OUT_W * 4 + BP * TWO_H * 4)
    enc_per_step = BP * GT * 4 + GT * TWO_H * 2
    enc_out = pl.pallas_call(
        enc_kernel,
        out_shape=jax.ShapeDtypeStruct((BP, OUT_W), f32),
        grid_spec=pltpu.PrefetchScalarGridSpec(
            num_scalar_prefetch=0,
            grid=(nk,),
            in_specs=[
                pl.BlockSpec((BP, GT), lambda k: (0, k)),        # x tile
                pl.BlockSpec((GT, TWO_H), lambda k: (k, 0)),     # W_enc tile
                pl.BlockSpec((TWO_H, HEAD_W), lambda k: (0, 0)),  # W_heads (resident)
                pl.BlockSpec((BP, OUT_W), lambda k: (0, 0)),     # aux slab (resident)
                pl.BlockSpec((7, TWO_H), lambda k: (0, 0)),      # small vectors
            ],
            out_specs=pl.BlockSpec((BP, OUT_W), lambda k: (0, 0)),
            scratch_shapes=[pltpu.VMEM((BP, TWO_H), f32)],
        ),
        compiler_params=pltpu.CompilerParams(
            dimension_semantics=("arbitrary",),
            vmem_limit_bytes=_vmem_limit(enc_resident, enc_per_step)),
        cost_estimate=pl.CostEstimate(
            flops=int(2 * BP * G_pad * TWO_H + 2 * BP * TWO_H * HEAD_W),
            transcendentals=int(BP * (G_pad + HEAD_W + 4 * L + 16)),
            bytes_accessed=int(sum(a.size * a.dtype.itemsize for a in enc_args)
                               + BP * OUT_W * 4)),
    )(*enc_args)

    # ===== call 2: decoder head + ZINB — (phase, gene-tile) grid =============
    def dec_kernel(enc_ref, x_ref, lgx1_ref, wdec0_ref, wds_ref, wdd_ref,
                   sv_ref, gene_ref, out_ref, hd_scr, m_scr, s_scr, rec_scr):
        p = pl.program_id(0)          # 0: online-softmax stats, 1: ZINB pass
        k = pl.program_id(1)          # gene tile
        nk_ = pl.num_programs(1)

        @pl.when((p == 0) & (k == 0))
        def _():
            # decoder first FC (tiny) computed once, cached in VMEM scratch
            z = enc_ref[:, 0:L]
            hd = jnp.dot(z.astype(bf16), wdec0_ref[...],
                         preferred_element_type=f32)
            hd = hd + sv_ref[4:5, 0:H]
            hd = _bn_relu(hd, sv_ref[5:6, 0:H], sv_ref[6:7, 0:H], n_valid)
            hd_scr[...] = hd
            m_scr[...] = jnp.full(m_scr.shape, _NEG_BIG, f32)
            s_scr[...] = jnp.zeros(s_scr.shape, f32)
            rec_scr[...] = jnp.zeros(rec_scr.shape, f32)

        hd_bf = hd_scr[...].astype(bf16)
        logits = (jnp.dot(hd_bf, wds_ref[...], preferred_element_type=f32)
                  + gene_ref[0:1, :])               # padded genes get bias -1e30

        @pl.when(p == 0)
        def _():   # online softmax statistics (running max / running sum)
            tmax = jnp.max(logits, axis=-1, keepdims=True)
            m_new = jnp.maximum(m_scr[...], tmax)
            s_scr[...] = (s_scr[...] * jnp.exp(m_scr[...] - m_new)
                          + jnp.sum(jnp.exp(logits - m_new),
                                    axis=-1, keepdims=True))
            m_scr[...] = m_new

        @pl.when(p == 1)
        def _():   # ZINB reconstruction accumulation
            xt = x_ref[...]
            library = enc_ref[:, L:L + 1]
            # log px_rate straight from the softmax intermediates: saves one
            # (B,G) log vs log(mu+eps); log(s) is exact (no approx-recip bias).
            log_norm = library - m_scr[...] - jnp.log(s_scr[...])
            log_mu = logits + log_norm
            mu = jnp.exp(log_mu)                    # = px_rate
            pi = (jnp.dot(hd_bf, wdd_ref[...], preferred_element_type=f32)
                  + gene_ref[1:2, :])               # px_dropout logits
            theta = gene_ref[2:3, :]
            log_theta = gene_ref[3:4, :]
            lg_theta = gene_ref[4:5, :]
            gmask = gene_ref[5:6, :]

            log_theta_mu = jnp.log(theta + mu + ZINB_EPS)
            sp_neg_pi = _softplus(-pi)
            t_ratio = theta * (log_theta - log_theta_mu)
            case_zero = _softplus(-pi + t_ratio) - sp_neg_pi
            case_nz = (-pi - sp_neg_pi + t_ratio
                       + xt * (log_mu - log_theta_mu)
                       + _lgamma_pos(xt + theta) - lg_theta - lgx1_ref[...])
            res = jnp.where(xt < ZINB_EPS, case_zero, case_nz) * gmask
            rec_scr[...] += jnp.sum(res, axis=-1, keepdims=True)

            @pl.when(k == nk_ - 1)
            def _():
                kl_z = enc_ref[:, L + 1:L + 2]
                kl_l = enc_ref[:, L + 2:L + 3]
                reconst = -rec_scr[...]
                col = jax.lax.broadcasted_iota(jnp.int32, (BP, OUT_W), 1)
                out_ref[...] = jnp.where(col == 0, reconst + kl_l,
                                         jnp.where(col == 1, kl_z, 0.0))

    dec_args = (enc_out, xp, lgx1, packed["W_dec0"], packed["W_ds"],
                packed["W_dd"], packed["small"], packed["gene"])
    dec_resident = (2 * BP * OUT_W * 4 + L * H * 2
                    + packed["small"].size * 4 + BP * H * 4 + 3 * BP * 4)
    dec_per_step = 2 * BP * GT * 4 + 2 * H * GT * 2 + 6 * GT * 4
    dec_out = pl.pallas_call(
        dec_kernel,
        out_shape=jax.ShapeDtypeStruct((BP, OUT_W), f32),
        grid_spec=pltpu.PrefetchScalarGridSpec(
            num_scalar_prefetch=0,
            grid=(2, nk),
            in_specs=[
                pl.BlockSpec((BP, OUT_W), lambda p, k: (0, 0)),   # enc slab
                pl.BlockSpec((BP, GT), lambda p, k: (0, k * p)),  # x (phase 1 only)
                pl.BlockSpec((BP, GT), lambda p, k: (0, k * p)),  # lgamma(x+1)
                pl.BlockSpec((L, H), lambda p, k: (0, 0)),        # W_dec0
                pl.BlockSpec((H, GT), lambda p, k: (0, k)),       # W scale head
                pl.BlockSpec((H, GT), lambda p, k: (0, k * p)),   # W dropout head
                pl.BlockSpec((7, TWO_H), lambda p, k: (0, 0)),    # small vectors
                pl.BlockSpec((6, GT), lambda p, k: (0, k)),       # gene vectors
            ],
            out_specs=pl.BlockSpec((BP, OUT_W), lambda p, k: (0, 0)),
            scratch_shapes=[pltpu.VMEM((BP, H), f32),   # cached decoder hidden
                            pltpu.VMEM((BP, 1), f32),   # running max
                            pltpu.VMEM((BP, 1), f32),   # running sum
                            pltpu.VMEM((BP, 1), f32)],  # reconst accumulator
        ),
        compiler_params=pltpu.CompilerParams(
            # both axes are reductions (softmax stats / reconst accumulator);
            # TODO(synk): for v7x's 2 TCs split the gene axis in the wrapper
            # and merge the two partial (m, s, reconst) sets.
            dimension_semantics=("arbitrary", "arbitrary"),
            vmem_limit_bytes=_vmem_limit(dec_resident, dec_per_step)),
        cost_estimate=pl.CostEstimate(
            flops=int(2 * BP * L * H + 3 * (2 * BP * H * G_pad) + 60 * BP * G_pad),
            transcendentals=int(10 * BP * G_pad),
            bytes_accessed=int(sum(a.size * a.dtype.itemsize for a in dec_args)
                               + H * G_pad * 2 + BP * OUT_W * 4)),
    )(*dec_args)

    return dec_out[:B, 0], dec_out[:B, 1]


# ------------------------- pure-JAX reference (checking) ---------------------

def vae_reference(x, llm, llv, eps_z, eps_l, params):
    (zW0, zb0, zg0, zbe0, zWm, zbm, zWv, zbv,
     lW0, lb0, lg0, lbe0, lWm, lbm, lWv, lbv,
     dW0, db0, dg0, dbe0, dWs, dbs, dWd, dbd, pxr) = params

    def bn_relu(h, g, b):
        m = jnp.mean(h, axis=0, keepdims=True)
        v = jnp.mean((h - m) ** 2, axis=0, keepdims=True)
        return jnp.maximum(g * (h - m) / jnp.sqrt(v + BN_EPS) + b, 0.0)

    xl = jnp.log(1.0 + x)
    h = bn_relu(xl @ zW0 + zb0, zg0, zbe0)
    qz_m = h @ zWm + zbm
    qz_v = jnp.exp(h @ zWv + zbv)
    z = qz_m + jnp.sqrt(qz_v) * eps_z

    hl = bn_relu(xl @ lW0 + lb0, lg0, lbe0)
    ql_m = hl @ lWm + lbm
    ql_v = jnp.exp(hl @ lWv + lbv)
    library = ql_m + jnp.sqrt(ql_v) * eps_l

    hd = bn_relu(z @ dW0 + db0, dg0, dbe0)
    px_scale = jax.nn.softmax(hd @ dWs + dbs, axis=-1)
    px_rate = jnp.exp(library) * px_scale
    px_dropout = hd @ dWd + dbd
    theta = jnp.exp(pxr)

    lg = jax.scipy.special.gammaln
    sp = jax.nn.softplus
    mu, pi = px_rate, px_dropout
    lt = jnp.log(theta + ZINB_EPS)
    ltm = jnp.log(theta + mu + ZINB_EPS)
    case_zero = sp(-pi + theta * lt - theta * ltm) - sp(-pi)
    case_non_zero = (-pi - sp(-pi) + theta * lt - theta * ltm
                     + x * jnp.log(mu + ZINB_EPS) - x * ltm
                     + lg(x + theta) - lg(theta) - lg(x + 1.0))
    res = ((x < ZINB_EPS).astype(jnp.float32) * case_zero
           + (x > ZINB_EPS).astype(jnp.float32) * case_non_zero)
    reconst = -jnp.sum(res, axis=-1)

    kl_z = 0.5 * jnp.sum(qz_v + qz_m ** 2 - 1.0 - jnp.log(qz_v), axis=-1)
    kl_l = jnp.sum(0.5 * jnp.log(llv) - 0.5 * jnp.log(ql_v)
                   + (ql_v + (ql_m - llm) ** 2) / (2.0 * llv) - 0.5, axis=-1)
    return reconst + kl_l, kl_z


# ----------------------------- parameter init --------------------------------

def init_params(key, n_input, n_hidden, n_latent):
    ks = jax.random.split(key, 10)
    w = lambda k, shp, s=0.05: (s * jax.random.normal(k, shp)).astype(jnp.float32)
    zeros = lambda *shp: jnp.zeros(shp, jnp.float32)
    ones = lambda *shp: jnp.ones(shp, jnp.float32)
    G, H, L = n_input, n_hidden, n_latent
    params = [
        # z encoder: FCLayers(G->H) + mean/var heads (H->L)
        w(ks[0], (G, H)), zeros(1, H), ones(1, H), zeros(1, H),
        w(ks[1], (H, L)), zeros(1, L), w(ks[2], (H, L)), zeros(1, L),
        # l encoder: FCLayers(G->H) + mean/var heads (H->1)
        w(ks[3], (G, H)), zeros(1, H), ones(1, H), zeros(1, H),
        w(ks[4], (H, 1)), zeros(1, 1), w(ks[5], (H, 1)), zeros(1, 1),
        # decoder: FCLayers(L->H) + scale head (H->G) + dropout head (H->G)
        w(ks[6], (L, H)), zeros(1, H), ones(1, H), zeros(1, H),
        w(ks[7], (H, G)), zeros(1, G), w(ks[8], (H, G)), zeros(1, G),
        # px_r ('gene' dispersion): (G,) kept as (1, G)
        w(ks[9], (1, G), s=1.0),
    ]
    return params


# ----------------------------------- main ------------------------------------

if __name__ == "__main__":
    B, G, H, L = 8, 256, 128, 16          # batch, n_input, n_hidden, n_latent
    key = jax.random.PRNGKey(0)
    kx, kez, kel, kp = jax.random.split(key, 4)

    x = jax.random.poisson(kx, 5.0, (B, G)).astype(jnp.float32)   # count data
    local_l_mean = jnp.log(jnp.sum(x, axis=1, keepdims=True) + 1.0)
    local_l_var = jnp.full((B, 1), 0.5, jnp.float32)
    eps_z = jax.random.normal(kez, (B, L), jnp.float32)            # rsample noise
    eps_l = jax.random.normal(kel, (B, 1), jnp.float32)

    params = init_params(kp, G, H, L)
    packed = pack_params(params, H, L)

    out1, out2 = vae_forward(x, local_l_mean, local_l_var, eps_z, eps_l, packed)
    jax.block_until_ready((out1, out2))

    ref1, ref2 = vae_reference(x, local_l_mean, local_l_var, eps_z, eps_l, params)
    np.testing.assert_allclose(np.asarray(out1), np.asarray(ref1), rtol=5e-2, atol=5e-1)
    np.testing.assert_allclose(np.asarray(out2), np.asarray(ref2), rtol=5e-2, atol=5e-1)

    print("KERNEL_OK")
</pallas_src>

<mosaic_0001>
module attributes {stable_mosaic.version = 11 : i64} {
  func.func @enc_kernel(%arg0: i32, %arg1: memref<16x128xf32, #tpu.memory_space<vmem>>, %arg2: memref<128x256xbf16, #tpu.memory_space<vmem>>, %arg3: memref<256x128xbf16, #tpu.memory_space<vmem>>, %arg4: memref<16x128xf32, #tpu.memory_space<vmem>>, %arg5: memref<7x256xf32, #tpu.memory_space<vmem>>, %arg6: memref<16x128xf32, #tpu.memory_space<vmem>>, %arg7: memref<16x256xf32, #tpu.memory_space<vmem>>) attributes {dimension_semantics = [#tpu.dimension_semantics<arbitrary>], iteration_bounds = array<i64: 2>, scalar_prefetch = 0 : i64, scratch_operands = 1 : i64, tpu.core_type = #tpu.core_type<tc>, window_params = [{transform_indices = @transform_0, window_bounds = array<i64: 16, 128>}, {transform_indices = @transform_1, window_bounds = array<i64: 128, 256>}, {pipeline_mode = #tpu.pipeline_mode<synchronous>, transform_indices = @transform_2, window_bounds = array<i64: 256, 128>}, {pipeline_mode = #tpu.pipeline_mode<synchronous>, transform_indices = @transform_3, window_bounds = array<i64: 16, 128>}, {pipeline_mode = #tpu.pipeline_mode<synchronous>, transform_indices = @transform_4, window_bounds = array<i64: 7, 256>}, {pipeline_mode = #tpu.pipeline_mode<synchronous>, transform_indices = @transform_5, window_bounds = array<i64: 16, 128>}]} {
    %c0_i32 = arith.constant 0 : i32
    %0 = arith.cmpi eq, %arg0, %c0_i32 : i32
    %1 = arith.extui %0 : i1 to i32
    %c0_i32_0 = arith.constant 0 : i32
    %2 = arith.cmpi ne, %1, %c0_i32_0 : i32
    scf.if %2 {
      %cst_10 = arith.constant 0.000000e+00 : f32
      %16 = vector.broadcast %cst_10 : f32 to vector<16x256xf32>
      %c0_11 = arith.constant 0 : index
      %c0_12 = arith.constant 0 : index
      %17 = vector.load %arg7[%c0_11, %c0_12] : memref<16x256xf32, #tpu.memory_space<vmem>>, vector<16x256xf32>
      tpu.vector_store %arg7[%c0_11, %c0_12], %16 {strides = array<i32>} : memref<16x256xf32, #tpu.memory_space<vmem>>, vector<16x256xf32>,
    } else {
    }
    %c0 = arith.constant 0 : index
    %c0_1 = arith.constant 0 : index
    %3 = vector.load %arg1[%c0, %c0_1] : memref<16x128xf32, #tpu.memory_space<vmem>>, vector<16x128xf32>
    %cst = arith.constant 1.000000e+00 : f32
    %4 = vector.broadcast %cst : f32 to vector<16x128xf32>
    %5 = arith.addf %4, %3 : vector<16x128xf32>
    %6 = math.log %5 : vector<16x128xf32>
    %c0_2 = arith.constant 0 : index
    %c0_3 = arith.constant 0 : index
    %7 = vector.load %arg7[%c0_2, %c0_3] : memref<16x256xf32, #tpu.memory_space<vmem>>, vector<16x256xf32>
    %8 = arith.truncf %6 : vector<16x128xf32> to vector<16x128xbf16>
    %c0_4 = arith.constant 0 : index
    %c0_5 = arith.constant 0 : index
    %9 = vector.load %arg2[%c0_4, %c0_5] : memref<128x256xbf16, #tpu.memory_space<vmem>>, vector<128x256xbf16>
    %cst_6 = arith.constant dense<0.000000e+00> : vector<16x256xf32>
    %10 = tpu.matmul %8, %9, %cst_6 {dimension_numbers = #tpu.dot_dimension_numbers<[1], [0], [0], [1], [0, 0, 1, 1], [], []>} : vector<16x128xbf16>, vector<128x256xbf16>, vector<16x256xf32> -> vector<16x256xf32>
    %11 = arith.addf %7, %10 : vector<16x256xf32>
    %c0_7 = arith.constant 0 : index
    %c0_8 = arith.constant 0 : index
    %12 = vector.load %arg7[%c0_7, %c0_8] : memref<16x256xf32, #tpu.memory_space<vmem>>, vector<16x256xf32>
    tpu.vector_store %arg7[%c0_7, %c0_8], %11 {strides = array<i32>} : memref<16x256xf32, #tpu.memory_space<vmem>>, vector<16x256xf32>,
    %c1_i32 = arith.constant 1 : i32
    %13 = arith.cmpi eq, %arg0, %c1_i32 : i32
    %14 = arith.extui %13 : i1 to i32
    %c0_i32_9 = arith.constant 0 : i32
    %15 = arith.cmpi ne, %14, %c0_i32_9 : i32
    scf.if %15 {
      %c0_10 = arith.constant 0 : index
      %c0_11 = arith.constant 0 : index
      %16 = vector.load %arg7[%c0_10, %c0_11] : memref<16x256xf32, #tpu.memory_space<vmem>>, vector<16x256xf32>
      %c0_12 = arith.constant 0 : index
      %c0_13 = arith.constant 0 : index
      %17 = vector.load %arg5[%c0_12, %c0_13] : memref<7x256xf32, #tpu.memory_space<vmem>>, vector<1x256xf32>
      %18 = vector.broadcast %17 : vector<1x256xf32> to vector<16x256xf32>
      %19 = arith.addf %16, %18 : vector<16x256xf32>
      %c1 = arith.constant 1 : index
      %c0_14 = arith.constant 0 : index
      %20 = vector.load %arg5[%c1, %c0_14] : memref<7x256xf32, #tpu.memory_space<vmem>>, vector<1x256xf32>
      %c2 = arith.constant 2 : index
      %c0_15 = arith.constant 0 : index
      %21 = vector.load %arg5[%c2, %c0_15] : memref<7x256xf32, #tpu.memory_space<vmem>>, vector<1x256xf32>
      %22 = tpu.iota {dimensions = array<i32: 0>} : vector<16x1xi32>
      %c8_i32 = arith.constant 8 : i32
      %23 = vector.broadcast %c8_i32 : i32 to vector<16x1xi32>
      %24 = arith.cmpi slt, %22, %23 : vector<16x1xi32>
      %25 = arith.extui %24 : vector<16x1xi1> to vector<16x1xi32>
      %26 = arith.sitofp %25 : vector<16x1xi32> to vector<16x1xf32>
      %27 = vector.broadcast %26 : vector<16x1xf32> to vector<16x256xf32>
      %28 = arith.mulf %19, %27 : vector<16x256xf32>
      %cst_16 = arith.constant dense<0.000000e+00> : vector<256xf32>
      %29 = vector.multi_reduction <add>, %28, %cst_16 [0] : vector<16x256xf32> to vector<256xf32>
      %30 = vector.shape_cast %29 : vector<256xf32> to vector<1x256xf32>
      %cst_17 = arith.constant 1.250000e-01 : f32
      %31 = vector.broadcast %cst_17 : f32 to vector<1x256xf32>
      %32 = arith.mulf %30, %31 : vector<1x256xf32>
      %33 = vector.broadcast %32 : vector<1x256xf32> to vector<16x256xf32>
      %34 = arith.subf %19, %33 : vector<16x256xf32>
      %35 = vector.broadcast %26 : vector<16x1xf32> to vector<16x256xf32>
      %36 = arith.mulf %34, %35 : vector<16x256xf32>
      %37 = arith.mulf %36, %36 : vector<16x256xf32>
      %cst_18 = arith.constant dense<0.000000e+00> : vector<256xf32>
      %38 = vector.multi_reduction <add>, %37, %cst_18 [0] : vector<16x256xf32> to vector<256xf32>
      %39 = vector.shape_cast %38 : vector<256xf32> to vector<1x256xf32>
      %cst_19 = arith.constant 1.250000e-01 : f32
      %40 = vector.broadcast %cst_19 : f32 to vector<1x256xf32>
      %41 = arith.mulf %39, %40 : vector<1x256xf32>
      %42 = vector.broadcast %32 : vector<1x256xf32> to vector<16x256xf32>
      %43 = arith.subf %19, %42 : vector<16x256xf32>
      %44 = vector.broadcast %20 : vector<1x256xf32> to vector<16x256xf32>
      %45 = arith.mulf %44, %43 : vector<16x256xf32>
      %cst_20 = arith.constant 1.000000e-03 : f32
      %46 = vector.broadcast %cst_20 : f32 to vector<1x256xf32>
      %47 = arith.addf %41, %46 : vector<1x256xf32>
      %48 = math.rsqrt %47 : vector<1x256xf32>
      %49 = vector.broadcast %48 : vector<1x256xf32> to vector<16x256xf32>
      %50 = arith.mulf %45, %49 : vector<16x256xf32>
      %51 = vector.broadcast %21 : vector<1x256xf32> to vector<16x256xf32>
      %52 = arith.addf %50, %51 : vector<16x256xf32>
      %cst_21 = arith.constant 0.000000e+00 : f32
      %53 = vector.broadcast %cst_21 : f32 to vector<16x256xf32>
      %54 = arith.maximumf %52, %53 : vector<16x256xf32>
      %55 = arith.truncf %54 : vector<16x256xf32> to vector<16x256xbf16>
      %c0_22 = arith.constant 0 : index
      %c0_23 = arith.constant 0 : index
      %56 = vector.load %arg3[%c0_22, %c0_23] : memref<256x128xbf16, #tpu.memory_space<vmem>>, vector<256x128xbf16>
      %cst_24 = arith.constant dense<0.000000e+00> : vector<16x128xf32>
      %57 = tpu.matmul %55, %56, %cst_24 {dimension_numbers = #tpu.dot_dimension_numbers<[1], [0], [0], [1], [0, 0, 1, 1], [], []>} : vector<16x256xbf16>, vector<256x128xbf16>, vector<16x128xf32> -> vector<16x128xf32>
      %c3 = arith.constant 3 : index
      %c0_25 = arith.constant 0 : index
      %58 = vector.load %arg5[%c3, %c0_25] : memref<7x256xf32, #tpu.memory_space<vmem>>, vector<1x128xf32>
      %59 = vector.broadcast %58 : vector<1x128xf32> to vector<16x128xf32>
      %60 = arith.addf %57, %59 : vector<16x128xf32>
      %61 = vector.extract_strided_slice %60 {offsets = [0, 0], sizes = [16, 16], strides = [1, 1]} : vector<16x128xf32> to vector<16x16xf32>
      %62 = vector.extract_strided_slice %60 {offsets = [0, 16], sizes = [16, 16], strides = [1, 1]} : vector<16x128xf32> to vector<16x16xf32>
      %63 = math.exp %62 : vector<16x16xf32>
      %64 = vector.extract_strided_slice %60 {offsets = [0, 32], sizes = [16, 1], strides = [1, 1]} : vector<16x128xf32> to vector<16x1xf32>
      %65 = vector.extract_strided_slice %60 {offsets = [0, 33], sizes = [16, 1], strides = [1, 1]} : vector<16x128xf32> to vector<16x1xf32>
      %66 = math.exp %65 : vector<16x1xf32>
      %c0_26 = arith.constant 0 : index
      %c0_27 = arith.constant 0 : index
      %67 = vector.load %arg4[%c0_26, %c0_27] : memref<16x128xf32, #tpu.memory_space<vmem>>, vector<16x16xf32>
      %c0_28 = arith.constant 0 : index
      %c16 = arith.constant 16 : index
      %68 = vector.load %arg4[%c0_28, %c16] : memref<16x128xf32, #tpu.memory_space<vmem>>, vector<16x1xf32>
      %c0_29 = arith.constant 0 : index
      %c17 = arith.constant 17 : index
      %69 = vector.load %arg4[%c0_29, %c17] : memref<16x128xf32, #tpu.memory_space<vmem>>, vector<16x1xf32>
      %c0_30 = arith.constant 0 : index
      %c18 = arith.constant 18 : index
      %70 = vector.load %arg4[%c0_30, %c18] : memref<16x128xf32, #tpu.memory_space<vmem>>, vector<16x1xf32>
      %71 = math.sqrt %63 : vector<16x16xf32>
      %72 = arith.mulf %71, %67 : vector<16x16xf32>
      %73 = arith.addf %61, %72 : vector<16x16xf32>
      %74 = math.sqrt %66 : vector<16x1xf32>
      %75 = arith.mulf %74, %68 : vector<16x1xf32>
      %76 = arith.addf %64, %75 : vector<16x1xf32>
      %77 = arith.mulf %61, %61 : vector<16x16xf32>
      %78 = arith.addf %63, %77 : vector<16x16xf32>
      %cst_31 = arith.constant 1.000000e+00 : f32
      %79 = vector.broadcast %cst_31 : f32 to vector<16x16xf32>
      %80 = arith.subf %78, %79 : vector<16x16xf32>
      %81 = math.log %63 : vector<16x16xf32>
      %82 = arith.subf %80, %81 : vector<16x16xf32>
      %cst_32 = arith.constant dense<0.000000e+00> : vector<16xf32>
      %83 = vector.multi_reduction <add>, %82, %cst_32 [1] : vector<16x16xf32> to vector<16xf32>
      %84 = vector.shape_cast %83 : vector<16xf32> to vector<16x1xf32>
      %cst_33 = arith.constant 5.000000e-01 : f32
      %85 = vector.broadcast %cst_33 : f32 to vector<16x1xf32>
      %86 = arith.mulf %85, %84 : vector<16x1xf32>
      %87 = math.log %70 : vector<16x1xf32>
      %88 = math.log %66 : vector<16x1xf32>
      %89 = arith.subf %87, %88 : vector<16x1xf32>
      %cst_34 = arith.constant 5.000000e-01 : f32
      %90 = vector.broadcast %cst_34 : f32 to vector<16x1xf32>
      %91 = arith.mulf %90, %89 : vector<16x1xf32>
      %92 = arith.subf %64, %69 : vector<16x1xf32>
      %93 = arith.mulf %92, %92 : vector<16x1xf32>
      %94 = arith.addf %66, %93 : vector<16x1xf32>
      %cst_35 = arith.constant 2.000000e+00 : f32
      %95 = vector.broadcast %cst_35 : f32 to vector<16x1xf32>
      %96 = arith.mulf %95, %70 : vector<16x1xf32>
      %97 = tpu.reciprocal %96 {approx = true} : vector<16x1xf32> -> vector<16x1xf32>
      %98 = arith.mulf %96, %97 : vector<16x1xf32>
      %cst_36 = arith.constant 2.000000e+00 : f32
      %99 = vector.broadcast %cst_36 : f32 to vector<16x1xf32>
      %100 = arith.subf %99, %98 : vector<16x1xf32>
      %101 = arith.mulf %97, %100 : vector<16x1xf32>
      %102 = arith.mulf %94, %101 : vector<16x1xf32>
      %103 = arith.addf %91, %102 : vector<16x1xf32>
      %cst_37 = arith.constant 5.000000e-01 : f32
      %104 = vector.broadcast %cst_37 : f32 to vector<16x1xf32>
      %105 = arith.subf %103, %104 : vector<16x1xf32>
      %cst_38 = arith.constant 0.000000e+00 : f32
      %106 = vector.broadcast %cst_38 : f32 to vector<16x128xf32>
      %c0_39 = arith.constant 0 : index
      %c0_40 = arith.constant 0 : index
      %107 = vector.load %arg6[%c0_39, %c0_40] : memref<16x128xf32, #tpu.memory_space<vmem>>, vector<16x128xf32>
      tpu.vector_store %arg6[%c0_39, %c0_40], %106 {strides = array<i32>} : memref<16x128xf32, #tpu.memory_space<vmem>>, vector<16x128xf32>,
      %c0_41 = arith.constant 0 : index
      %c0_42 = arith.constant 0 : index
      %108 = vector.load %arg6[%c0_41, %c0_42] : memref<16x128xf32, #tpu.memory_space<vmem>>, vector<16x16xf32>
      tpu.vector_store %arg6[%c0_41, %c0_42], %73 {strides = array<i32>} : memref<16x128xf32, #tpu.memory_space<vmem>>, vector<16x16xf32>,
      %c0_43 = arith.constant 0 : index
      %c16_44 = arith.constant 16 : index
      %109 = vector.load %arg6[%c0_43, %c16_44] : memref<16x128xf32, #tpu.memory_space<vmem>>, vector<16x1xf32>
      tpu.vector_store %arg6[%c0_43, %c16_44], %76 {strides = array<i32>} : memref<16x128xf32, #tpu.memory_space<vmem>>, vector<16x1xf32>,
      %c0_45 = arith.constant 0 : index
      %c17_46 = arith.constant 17 : index
      %110 = vector.load %arg6[%c0_45, %c17_46] : memref<16x128xf32, #tpu.memory_space<vmem>>, vector<16x1xf32>
      tpu.vector_store %arg6[%c0_45, %c17_46], %86 {strides = array<i32>} : memref<16x128xf32, #tpu.memory_space<vmem>>, vector<16x1xf32>,
      %c0_47 = arith.constant 0 : index
      %c18_48 = arith.constant 18 : index
      %111 = vector.load %arg6[%c0_47, %c18_48] : memref<16x128xf32, #tpu.memory_space<vmem>>, vector<16x1xf32>
      tpu.vector_store %arg6[%c0_47, %c18_48], %105 {strides = array<i32>} : memref<16x128xf32, #tpu.memory_space<vmem>>, vector<16x1xf32>,
    } else {
    }
    return
  }
  func.func @transform_0(%arg0: i32) -> (i32, i32) {
    %c0_i32 = arith.constant 0 : i32
    %c0_i32_0 = arith.constant 0 : i32
    return %c0_i32, %arg0 : i32, i32
  }
  func.func @transform_1(%arg0: i32) -> (i32, i32) {
    %c0_i32 = arith.constant 0 : i32
    %c0_i32_0 = arith.constant 0 : i32
    return %arg0, %c0_i32 : i32, i32
  }
  func.func @transform_2(%arg0: i32) -> (i32, i32) {
    %c0_i32 = arith.constant 0 : i32
    %c0_i32_0 = arith.constant 0 : i32
    %c0_i32_1 = arith.constant 0 : i32
    return %c0_i32, %c0_i32_0 : i32, i32
  }
  func.func @transform_3(%arg0: i32) -> (i32, i32) {
    %c0_i32 = arith.constant 0 : i32
    %c0_i32_0 = arith.constant 0 : i32
    %c0_i32_1 = arith.constant 0 : i32
    return %c0_i32, %c0_i32_0 : i32, i32
  }
  func.func @transform_4(%arg0: i32) -> (i32, i32) {
    %c0_i32 = arith.constant 0 : i32
    %c0_i32_0 = arith.constant 0 : i32
    %c0_i32_1 = arith.constant 0 : i32
    return %c0_i32, %c0_i32_0 : i32, i32
  }
  func.func @transform_5(%arg0: i32) -> (i32, i32) {
    %c0_i32 = arith.constant 0 : i32
    %c0_i32_0 = arith.constant 0 : i32
    %c0_i32_1 = arith.constant 0 : i32
    return %c0_i32, %c0_i32_0 : i32, i32
  }
}

</mosaic_0001>

<bundles_post_ra>
// kernel: tpu_custom_call.1
= control target key start
LH: loop header
LB: loop body
LE: loop exit
PB: predicated region body
PF: predicated region fallthrough
CT: control target
= control target key end

     0   :  { %s1913_s0 = inlined_call_operand.hbm [shape: f32[16,256], index: 0, kind: input, shape index: {}]   ;;  %s1914_s1 = inlined_call_operand.hbm [shape: bf16[256,256], index: 1, kind: input, shape index: {}]   ;;  %s1915_s2 = inlined_call_operand.hbm [shape: bf16[256,128], index: 2, kind: input, shape index: {}]   ;;  %s1916_s3 = inlined_call_operand.hbm [shape: f32[16,128], index: 3, kind: input, shape index: {}]   ;;  %s1917_s4 = inlined_call_operand.hbm [shape: f32[7,256], index: 4, kind: input, shape index: {}]   ;;  %s1918_s5 = inlined_call_operand.hbm [shape: f32[16,128], index: 5, kind: output, shape index: {}]  }
   0x1   :  { %1921 = sst [smem:[#allocation18_spill]] %s1913_s0 }
   0x2   :  { %10 = vsyncpa [#allocation4], 0 }
   0x3   :  { %12 = vsyncpa [#allocation4 + $0x1], 0 }
   0x4   :  { %13 = vsyncpa [#allocation7], 0 }
   0x5   :  { %15 = vsyncpa [#allocation7 + $0x1], 0 }
   0x6   :  { %16 = vsyncpa [#allocation10], 0 }
   0x7   :  { %17 = vsyncpa [#allocation5], 0  ;;  %s1589_s18 = smov 0   ;;  %s1591_s19 = smov 0  }
   0x8   :  { %s1593_s20 = smov 0   ;;  %s1595_s21 = smov 0  }
   0x9 LB: > { %s1608_s22 = sadd.s32 4294967295, %s1534_s21   ;;  %s1611_s23 = sadd.s32 1, %s1534_s21   ;;  %s1534_s21 = sphi %s1595_s21, %s1937_s21   ;;  %s1530_s20 = sphi %s1593_s20, %s1936_s20   ;;  %s1526_s19 = sphi %s1591_s19, %s1935_s19   ;;  %s1522_s18 = sphi %s1589_s18, %s1934_s18  }
   0xa   : > { %s27_s24 = ssub.s32 %s1534_s21, %s1611_s23  ;;  %s30_s25 = sadd.s32 1, %s1530_s20 }
   0xb   : > { %p28_p0 = scmp.eq.s32.totalorder %s27_s24, 0  ;;  %p37_p1 = scmp.ne.s32.totalorder %s1530_s20, %s1526_s19 }
   0xc   : > { %p38_p2 = scmp.eq.s32.totalorder %s1534_s21, 0  ;;  %p43_p3 = scmp.ne.s32.totalorder %s1526_s19, %s1522_s18 }
   0xd   : > { %s1621_s26 = scalar_select %p28_p0, %s1530_s20, %s30_s25  }
   0xe   : > { %p1623_p4 = por %p38_p2, %p37_p1  ;;  %p1919_p5 = scmp.eq.s32.totalorder %s1608_s22, 0 }
   0xf   : > { %p1076_p6 = scmp.ge.s32.totalorder %s1534_s21, 1  ;;  %p164_p7 = scmp.lt.s32.totalorder %s1534_s21, 3 }
  0x10   : > { %p1632_p8 = por %p1919_p5, %p43_p3  ;;  %s1536_s30 = smov [#allocation8]  }
  0x11   : > { %p1637_p10 = pnand %p1076_p6, %p164_p7  ;;  %s176_s6 = sshll.u32 %s1536_s30, 4  ;;  %s177_s6 = int_to_ptr.vmem [resolvable:$true] %s176_s6 }
  0x12   : > { %s1923_s28 = scalar_select %p1632_p8, 1, 0 }
  0x13   : > { %p1179_p11 = pneg %p1637_p10  ;;  %p1199_p13 = scmp.lt.s32.totalorder %s1534_s21, 2 }
  0x14   : > { %s1337_s9 = scalar_lea.vmem %s177_s6, 2048  ;;  %p1345_p7 = scmp.lt.s32.totalorder %s177_s6, %s177_s6 }
  0x15   : > { %p1645_p12 = pnand %p1179_p11, %p1919_p5  ;;  %p1652_p0 = pnand %p1199_p13, %p1623_p4 }
  0x16   : > { %p1338_p2 = scmp.ne.s32.totalorder %s177_s6, %s1337_s9  ;;  %p1346_p11 = scmp.lt.s32.totalorder %s1337_s9, %s1337_s9 }
  0x17   : > { %p1328_p1 = pneg %p1645_p12 }
  0x18   : > { %p1347_p9 = por %p1346_p11, %p1345_p7 }
  0x19   : > { %p1340_p3 = pnand %p1338_p2, %p1328_p1 }
  0x1b   : > { %p1341_p6 = pneg %p1340_p3 }
  0x1d   : > { %p1348_p5 = pnand %p1347_p9, %p1341_p6 }
  0x1f   : > { %1351 = shalt.err (!%p1348_p5)
}
  0x20   : > { %s1537_s10 = smov 64   ;;  %s1538_s11 = smov 4  }
  0x21   : > { %1182 = dma.hbm_to_vmem [thread:$0]  (!%p1645_p12), %s1915_s2, 2048, %s177_s6, [#allocation7], %s1537_s10, %s1537_s10, %s1538_s11  }
  0x22   : > { %s1539_s14 = smov [#allocation9]  }
  0x23   : > { %s189_s15 = sshll.u32 %s1539_s14, 4  ;;  %s190_s15 = int_to_ptr.vmem [resolvable:$true] %s189_s15 }
  0x24   : > { %s1363_s16 = scalar_lea.vmem %s190_s15, 256  ;;  %p1371_p9 = scmp.lt.s32.totalorder %s190_s15, %s190_s15 }
  0x25   : > { %p1364_p4 = scmp.ne.s32.totalorder %s190_s15, %s1363_s16  ;;  %p1372_p5 = scmp.lt.s32.totalorder %s1363_s16, %s1363_s16 }
  0x27   : > { %p1366_p13 = pnand %p1364_p4, %p1328_p1  ;;  %p1373_p3 = por %p1372_p5, %p1371_p9 }
  0x29   : > { %p1367_p2 = pneg %p1366_p13 }
  0x2b   : > { %p1374_p6 = pnand %p1373_p3, %p1367_p2 }
  0x2d   : > { %1377 = shalt.err (!%p1374_p6)
}
  0x2e   : > { %s1540_s17 = smov 128   ;;  %s1541_s18 = smov 8  }
  0x2f   : > { %1185 = dma.hbm_to_vmem [thread:$0]  (!%p1645_p12), %s1916_s3, 256, %s190_s15, [#allocation10], %s1540_s17, %s1540_s17, %s1541_s18  }
  0x30   : > { %s1678_s27 = sand.u32 1, %s1530_s20   ;;  %s1542_s30 = smov [#allocation11]  }
  0x31   : > { %s203_s6 = sshll.u32 %s1542_s30, 4  ;;  %s1081_s9 = sshll.u32 %s1678_s27, 4  ;;  %s204_s6 = int_to_ptr.vmem [resolvable:$true] %s203_s6 }
  0x32   : > { %s1389_s10 = scalar_lea.vmem %s204_s6, 256  ;;  %p1397_p13 = scmp.lt.s32.totalorder %s204_s6, %s204_s6 }
  0x33   : > { %p1390_p7 = scmp.ne.s32.totalorder %s204_s6, %s1389_s10  ;;  %p1398_p2 = scmp.lt.s32.totalorder %s1389_s10, %s1389_s10 }
  0x35   : > { %p1392_p11 = pnand %p1390_p7, %p1328_p1  ;;  %p1399_p9 = por %p1398_p2, %p1397_p13 }
  0x37   : > { %p1393_p4 = pneg %p1392_p11 }
  0x39   : > { %p1400_p5 = pnand %p1399_p9, %p1393_p4 }
  0x3b   : > { %1403 = shalt.err (!%p1400_p5)
}
  0x3c   : > { %1188 = dma.hbm_to_vmem [thread:$0]  (!%p1645_p12), %s1917_s4, 256, %s204_s6, [#allocation10]  }
  0x3d   : > { %s1082_s13 = sshll.u32 %s1534_s21, 7  ;;  %s1927_s0 = sld [smem:[#allocation18_spill]] }
  0x3e   : > { %s218_s24 = scalar_lea.vmem [#allocation3], %s1081_s9  ;;  %s215_s7 = scalar_lea.sflag [#allocation4], %s1678_s27 }
  0x3f   : > { %s224_s25 = sshll.u32 %s218_s24, 4  ;;  %p1406_p3 = pneg %p1652_p0  ;;  %s1695_s25 = int_to_ptr.vmem [resolvable:$true] %s224_s25 }
  0x43   : > { %s1693_s16 = scalar_lea.hbm %s1927_s0, %s1082_s13  ;;  %s1409_s11 = scalar_lea.hbm %s1927_s0, 512 }
  0x44   : > { %s1404_s30 = scalar_lea.hbm %s1693_s16, 256  ;;  %p1410_p7 = scmp.lt.s32.totalorder %s1693_s16, %s1927_s0 }
  0x45   : > { %p1405_p1 = scmp.ne.s32.totalorder %s1693_s16, %s1404_s30  ;;  %p1411_p11 = scmp.lt.s32.totalorder %s1409_s11, %s1404_s30 }
  0x47   : > { %p1407_p12 = pnand %p1406_p3, %p1405_p1  ;;  %p1412_p4 = por %p1411_p11, %p1410_p7 }
  0x49   : > { %p1408_p6 = pneg %p1407_p12 }
  0x4b   : > { %p1413_p13 = pnand %p1412_p4, %p1408_p6 }
  0x4d   : > { %1416 = shalt.err (!%p1413_p13)
}
  0x4e   : > { %s1417_s9 = scalar_lea.vmem %s1695_s25, 256  ;;  %s1543_s14 = smov [#allocation3]  }
  0x4f   : > { %p1418_p2 = scmp.ne.s32.totalorder %s1695_s25, %s1417_s9  ;;  %s1422_s15 = sshll.u32 %s1543_s14, 4  ;;  %s1423_s15 = int_to_ptr.vmem [resolvable:$false] %s1422_s15 }
  0x50   : > { %s1424_s24 = scalar_lea.vmem %s1423_s15, 512  ;;  %p1425_p1 = scmp.lt.s32.totalorder %s1695_s25, %s1423_s15 }
  0x51   : > { %p1420_p9 = pnand %p1418_p2, %p1406_p3  ;;  %p1426_p12 = scmp.lt.s32.totalorder %s1424_s24, %s1417_s9 }
  0x53   : > { %p1421_p5 = pneg %p1420_p9  ;;  %p1427_p8 = por %p1426_p12, %p1425_p1 }
  0x55   : > { %p1428_p7 = pnand %p1427_p8, %p1421_p5 }
  0x57   : > { %1431 = shalt.err (!%p1428_p7)
}
  0x58   : > { %s1544_s30 = smov 256   ;;  %s234_s6 = sand.u32 1, %s1534_s21  }
  0x59   : > { %1192 = dma.hbm_to_vmem [thread:$0]  (!%p1652_p0), %s1693_s16, 256, %s1695_s25, %s215_s7, %s1544_s30, %s1540_s17, %s1541_s18  }
  0x5a   : > { %s1083_s10 = sshll.u32 %s1678_s27, 7  ;;  %s1136_s11 = sshll.u32 %s1534_s21, 11 }
  0x5b   : > { %s238_s12 = scalar_lea.vmem [#allocation6], %s1083_s10  ;;  %s1732_s15 = scalar_lea.hbm %s1914_s1, %s1136_s11 }
  0x5c   : > { %s246_s13 = sshll.u32 %s238_s12, 4  ;;  %s235_s24 = scalar_lea.sflag [#allocation7], %s234_s6  ;;  %s1734_s13 = int_to_ptr.vmem [resolvable:$true] %s246_s13 }
  0x5d   : > { %s1432_s0 = scalar_lea.hbm %s1732_s15, 2048  ;;  %s1437_s16 = scalar_lea.hbm %s1914_s1, 4096 }
  0x5e   : > { %p1433_p8 = scmp.ne.s32.totalorder %s1732_s15, %s1432_s0  ;;  %p1438_p4 = scmp.lt.s32.totalorder %s1732_s15, %s1914_s1 }
  0x5f   : > { %p1439_p13 = scmp.lt.s32.totalorder %s1437_s16, %s1432_s0 }
  0x60   : > { %p1435_p6 = pnand %p1433_p8, %p1406_p3 }
  0x61   : > { %p1440_p2 = por %p1439_p13, %p1438_p4 }
  0x62   : > { %p1436_p11 = pneg %p1435_p6 }
  0x64   : > { %p1441_p9 = pnand %p1440_p2, %p1436_p11 }
  0x66   : > { %1444 = shalt.err (!%p1441_p9)
}
  0x67   : > { %s1445_s30 = scalar_lea.vmem %s1734_s13, 2048  ;;  %s1545_s6 = smov [#allocation6]  }
  0x68   : > { %p1446_p5 = scmp.ne.s32.totalorder %s1734_s13, %s1445_s30  ;;  %s1450_s10 = sshll.u32 %s1545_s6, 4  ;;  %s1451_s10 = int_to_ptr.vmem [resolvable:$false] %s1450_s10 }
  0x69   : > { %s1452_s11 = scalar_lea.vmem %s1451_s10, 4096  ;;  %p1453_p7 = scmp.lt.s32.totalorder %s1734_s13, %s1451_s10 }
  0x6a   : > { %p1448_p1 = pnand %p1446_p5, %p1406_p3  ;;  %p1454_p8 = scmp.lt.s32.totalorder %s1452_s11, %s1445_s30 }
  0x6c   : > { %p1449_p12 = pneg %p1448_p1  ;;  %p1455_p6 = por %p1454_p8, %p1453_p7 }
  0x6e   : > { %p1456_p4 = pnand %p1455_p6, %p1449_p12 }
  0x70   : > { %1459 = shalt.err (!%p1456_p4)
}
  0x71   : > { %1195 = dma.hbm_to_vmem [thread:$0]  (!%p1652_p0), %s1732_s15, 2048, %s1734_s13, %s235_s24, %s1540_s17, %s1540_s17, %s1541_s18  }
  0x72   : > { %258 = sbr.rel (%p1637_p10) target bundleno = 1094 (0x446), region = 40  ;;  %s260_s0 = sand.u32 (!%p1637_p10), 1, %s1526_s19  }
  0x73   : > { %s1088_s12 = sshll.u32 (!%p1637_p10), %s260_s0, 4  ;;  %s261_s9 = scalar_lea.sflag (!%p1637_p10), [#allocation4], %s260_s0 }
  0x74   : > { %s1764_s14 = scalar_lea.vmem (!%p1637_p10), [#allocation3], %s1088_s12  ;;  %p1928_p3 = scmp.ne.s32.totalorder (!%p1637_p10), %s1923_s28, 0 }
  0x77   : > { %1501 = dma.done.wait (%p1928_p3), %s261_s9, 256  }
  0x78   : > { %1503 = vsyncadd (%p1928_p3), %s261_s9, 4294967040  ;;  %s269_s8 = sand.u32 1, %s1608_s22   ;;  %s1089_s21 = sshll.u32 %s260_s0, 7 }
  0x79   : > { %s270_s17 = scalar_lea.sflag [#allocation7], %s269_s8  ;;  %s1771_s18 = scalar_lea.vmem [#allocation6], %s1089_s21 }
  0x7a   : > { %1505 = dma.done.wait (%p1928_p3), %s270_s17, 2048  }
  0x7b   : > { %1507 = vsyncadd (%p1928_p3), %s270_s17, 4294965248  ;;  %p1929_p10 = scmp.eq.s32.totalorder %s1608_s22, 0 }
  0x7d   : > { %1509 = dma.done.wait (%p1929_p10), [#allocation7], 2048   ;;  %p1930_p0 = pmov %p1929_p10 }
  0x7f   : > { %1511 = vsyncadd (%p1930_p0), [#allocation7], 4294965248  ;;  %p1931_p11 = pmov %p1930_p0 }
  0x80   : > { %p1932_p13 = pmov %p1930_p0 }
  0x81   : > { %1513 = dma.done.wait (%p1931_p11), [#allocation10], 512  }
  0x82   : > { %1515 = vsyncadd (%p1932_p13), [#allocation10], 4294966784  ;;  %p1933_p2 = scmp.ne.s32.totalorder %s1608_s22, 0 }
  0x84   : > { %317 = sbr.rel (%p1933_p2) target bundleno = 140 (0x8c), region = 64 }
  0x89   : > { %v1546_v0 = vmov 0.0  }
  0x8a   : > { %318 = vst [vmem:[#allocation2 + $0x10] sm:$0xff] %v1546_v0  ;;  %319 = vst [vmem:[#allocation2] sm:$0xff] %v1546_v0 }
  0x8b   : > { %320 = vst [vmem:[#allocation2 + $0x18] sm:$0xff] %v1546_v0  ;;  %321 = vst [vmem:[#allocation2 + $0x8] sm:$0xff] %v1546_v0 }
  0x8c PF: > { %v1258_v1 = vld [vmem:[%s1771_s18 + $0x74] ss:$8 sps:$4 sm:$0xff]   ;;  %v1260_v2 = vld [vmem:[%s1771_s18 + $0x70] ss:$8 sps:$4 sm:$0xff]   ;;  %v1547_v3 = vmov 0   ;;  %p1110_p9 = scmp.ne.s32.totalorder %s1608_s22, 1 }
  0x8d   : > { %463 = vmatprep.mubr.bf16.mxu0 %v1547_v3  ;;  %431 = vmatprep.subr.bf16.mxu0 %v1258_v1  ;;  %v1261_v4 = vld [vmem:[%s1771_s18 + $0x64] ss:$8 sps:$4 sm:$0xff]   ;;  %v1263_v5 = vld [vmem:[%s1771_s18 + $0x60] ss:$8 sps:$4 sm:$0xff]   ;;  %v1264_v6 = vld [vmem:[%s1771_s18 + $0x54] ss:$8 sps:$4 sm:$0xff]  }
  0x8e   : > { %432 = vmatpush1.bf16.msra.mxu0 %v1260_v2  ;;  %v1266_v7 = vld [vmem:[%s1771_s18 + $0x50] ss:$8 sps:$4 sm:$0xff]   ;;  %v1267_v8 = vld [vmem:[%s1771_s18 + $0x44] ss:$8 sps:$4 sm:$0xff]   ;;  %v1269_v10 = vld [vmem:[%s1771_s18 + $0x40] ss:$8 sps:$4 sm:$0xff]  }
  0x8f   : > { %433 = vmatprep.subr.bf16.mxu0 %v1261_v4  ;;  %v322_v9 = vld [vmem:[%s1764_s14] sm:$0xff]  ;;  %v323_v11 = vld [vmem:[%s1764_s14 + $0x8] sm:$0xff]  ;;  %s1548_s28 = smov (!%p1110_p9), 15   ;;  %s1549_s29 = smov (!%p1110_p9), 17  }
  0x90   : > { %v324_v12 = vadd.f32 1.0, %v322_v9  ;;  %v1270_v13 = vld [vmem:[%s1771_s18 + $0x34] ss:$8 sps:$4 sm:$0xff]   ;;  %v325_v14 = vadd.f32 1.0, %v323_v11  ;;  %v1272_v15 = vld [vmem:[%s1771_s18 + $0x30] ss:$8 sps:$4 sm:$0xff]  }
  0x91   : > { %v1273_v16 = vld [vmem:[%s1771_s18 + $0x24] ss:$8 sps:$4 sm:$0xff]   ;;  %v1275_v17 = vld [vmem:[%s1771_s18 + $0x20] ss:$8 sps:$4 sm:$0xff]   ;;  %v1276_v18 = vld [vmem:[%s1771_s18 + $0x14] ss:$8 sps:$4 sm:$0xff]  }
  0x92   : > { %434 = vmatpush1.bf16.msra.mxu0 %v1263_v5  ;;  %1282 = vlog2.f32 %v324_v12  ;;  %v1278_v19 = vld [vmem:[%s1771_s18 + $0x10] ss:$8 sps:$4 sm:$0xff]   ;;  %v1279_v20 = vld [vmem:[%s1771_s18 + $0x4] ss:$8 sps:$4 sm:$0xff]   ;;  %v1281_v23 = vld [vmem:[%s1771_s18] ss:$8 sps:$4 sm:$0xff]  }
  0x93   : > { %435 = vmatprep.subr.bf16.mxu0 %v1264_v6  ;;  %1284 = vlog2.f32 %v325_v14  ;;  %v330_v27 = vld [vmem:[#allocation2 + $0x10] sm:$0xff]  ;;  %v331_v29 = vld [vmem:[#allocation2] sm:$0xff]  ;;  %v332_v32 = vld [vmem:[#allocation2 + $0x18] sm:$0xff]  ;;  %s1550_s13 = smov (!%p1110_p9), 16   ;;  %s1551_s15 = smov (!%p1110_p9), 1  }
  0x94   : > { %v333_v35 = vld [vmem:[#allocation2 + $0x8] sm:$0xff]  ;;  %s1552_s24 = smov (!%p1110_p9), 112   ;;  %s1554_s27 = smov (!%p1110_p9), 127  }
  0x95   : > { %s1555_s16 = smov (!%p1110_p9), 113  }
  0x96   : > { %436 = vmatpush1.bf16.msra.mxu0 %v1266_v7 }
  0x97   : > { %437 = vmatprep.subr.bf16.mxu0 %v1267_v8 }
  0x9a   : > { %438 = vmatpush1.bf16.msra.mxu0 %v1269_v10 }
  0x9b   : > { %439 = vmatprep.subr.bf16.mxu0 %v1270_v13 }
  0x9e   : > { %440 = vmatpush1.bf16.msra.mxu0 %v1272_v15 }
  0x9f   : > { %441 = vmatprep.subr.bf16.mxu0 %v1273_v16  ;;  %v1283_v21 = vpop.eup %1282 }
  0xa0   : > { %v1285_v22 = vpop.eup %1284  ;;  %v327_v24 = vmul.f32 0.6931472, %v1283_v21 }
  0xa1   : > { %v329_v25 = vmul.f32 0.6931472, %v1285_v22 }
  0xa2   : > { %442 = vmatpush1.bf16.msra.mxu0 %v1275_v17 }
  0xa3   : > { %443 = vmatprep.subr.bf16.mxu0 %v1276_v18  ;;  %v334_v26 = vpack.c.bf16 %v329_v25, %v327_v24 }
  0xa6   : > { %444 = vmatpush1.bf16.msra.mxu0 %v1278_v19 }
  0xa7   : > { %445 = vmatprep.subr.bf16.mxu0 %v1279_v20 }
  0xaa   : > { %446 = vmatpush1.bf16.msra.mxu0 %v1281_v23 }
  0xad   : > { %464 = vmatmul.mubr.bf16.vlgmr.msra.gmra.mxu0 %v334_v26 }
 0x16d   : > { %v465_v28 = vpop.f32.mrf.mxu0 }
 0x16e   : > { %v474_v30 = vadd.f32 %v465_v28, %v330_v27 }
 0x16f   : > { %v467_v31 = vpop.f32.mrf.mxu0 }
 0x170   : > { %478 = vst [vmem:[#allocation2 + $0x10] sm:$0xff] %v474_v30  ;;  %v475_v33 = vadd.f32 %v467_v31, %v331_v29 }
 0x171   : > { %v469_v34 = vpop.f32.mrf.mxu0 }
 0x172   : > { %479 = vst [vmem:[#allocation2] sm:$0xff] %v475_v33  ;;  %v476_v36 = vadd.f32 %v469_v34, %v332_v32  ;;  %485 = sbr.rel (%p1110_p9) target bundleno = 1078 (0x436), region = 68 }
 0x173   : > { %v471_v37 = vpop.f32.mrf.mxu0 }
 0x174   : > { %480 = vst [vmem:[#allocation2 + $0x18] sm:$0xff] %v476_v36  ;;  %v477_v38 = vadd.f32 %v471_v37, %v333_v35 }
 0x176   : > { %481 = vst [vmem:[#allocation2 + $0x8] sm:$0xff] %v477_v38 }
 0x177   : > { %v1286_v39 = vld [vmem:[#allocation8 + $0x78] sm:$0xff]   ;;  %v1288_v41 = vld [vmem:[#allocation8 + $0x70] sm:$0xff]   ;;  %v1290_v43 = vld [vmem:[#allocation8 + $0x68] sm:$0xff]   ;;  %v492_v44 = vlaneseq  ;;  %vm867_vm4 = vcmask 130048   ;;  %vm956_vm5 = vcmask 138368   ;;  %vm959_vm6 = vcmask 146568  }
 0x178   : > { %v1287_v40 = vld [vmem:[#allocation8 + $0x38] sm:$0xff]   ;;  %1137 = vmatprep.subr.bf16.mxu0 %v1286_v39  ;;  %v1289_v42 = vld [vmem:[#allocation8 + $0x30] sm:$0xff]   ;;  %v1291_v45 = vld [vmem:[#allocation8 + $0x28] sm:$0xff]   ;;  %vm962_vm7 = vcmask 154768  }
 0x179   : > { %1138 = vmatpush3.bf16.msra.mxu0 %v1287_v40  ;;  %v1292_v46 = vld [vmem:[#allocation8 + $0x60] sm:$0xff]   ;;  %v493_v47 = vshrl.u32 %v492_v44, 7  ;;  %v1294_v49 = vld [vmem:[#allocation8 + $0x58] sm:$0xff]   ;;  %v1296_v53 = vld [vmem:[#allocation8 + $0x50] sm:$0xff]  }
 0x17a   : > { %1139 = vmatprep.subr.bf16.mxu0 %v1288_v41  ;;  %v1293_v48 = vld [vmem:[#allocation8 + $0x20] sm:$0xff]   ;;  %v1295_v52 = vld [vmem:[#allocation8 + $0x18] sm:$0xff]   ;;  %v486_v59 = vld [vmem:[#allocation2 + $0x10] sm:$0xff] }
 0x17b   : > { %v1806_v50 = vsub.s32 0, %v493_v47  ;;  %v1808_v51 = vsub.s32 1, %v493_v47  ;;  %v487_v54 = vld [vmem:[#allocation2] sm:$0xff]  ;;  %v490_v56 = vld [vmem:[#allocation11] ss:$8 sm:$0x3] }
 0x17c   : > { %v488_v60 = vld [vmem:[#allocation2 + $0x18] sm:$0xff]  ;;  %v1812_v61 = vld [vmem:[#allocation9] sm:$0xff]  ;;  %v1297_v62 = vld [vmem:[#allocation8 + $0x10] sm:$0xff]  }
 0x17d   : > { %1140 = vmatpush3.bf16.msra.mxu0 %v1289_v42  ;;  %v489_v55 = vld [vmem:[#allocation2 + $0x8] sm:$0xff]  ;;  %v495_v57 = vrot.slane %v490_v56, %v1806_v50  ;;  %v499_v58 = vrot.slane %v490_v56, %v1808_v51  ;;  %892 = vrot.lane.b32.xlu1 %v1812_v61, %s1548_s28  ;;  %v1300_v10 = vld [vmem:[#allocation8 + $0x40] sm:$0xff]   ;;  %v507_v56 = vld [vmem:[#allocation11 + $0x1] ss:$8 sm:$0x3] }
 0x17e   : > { %1141 = vmatprep.subr.bf16.mxu0 %v1290_v43  ;;  %v1298_v3 = vld [vmem:[#allocation8 + $0x48] sm:$0xff]   ;;  %v1301_v13 = vld [vmem:[#allocation8] sm:$0xff]  }
 0x17f   : > { %v503_v63 = vadd.f32 %v499_v58, %v487_v54  ;;  %v505_v0 = vadd.f32 %v499_v58, %v489_v55  ;;  %v502_v1 = vadd.f32 %v495_v57, %v486_v59  ;;  %v504_v2 = vadd.f32 %v495_v57, %v488_v60  ;;  %v1816_v6 = vld [vmem:[#allocation9 + $0x8] sm:$0xff]  ;;  %v509_v59 = vld [vmem:[#allocation11 + $0x2] ss:$8 sm:$0x3] }
 0x180   : > { %v1299_v7 = vld [vmem:[#allocation8 + $0x8] sm:$0xff]   ;;  %v575_v57 = vrot.slane %v507_v56, %v1808_v51  ;;  %v571_v58 = vrot.slane %v507_v56, %v1806_v50 }
 0x181   : > { %1142 = vmatpush3.bf16.msra.mxu0 %v1291_v45  ;;  %v522_v4 = vmul.f32 0.0, %v505_v0  ;;  %v521_v5 = vmul.f32 0.0, %v504_v2  ;;  %894 = vrot.lane.b32.xlu1 %v1816_v6, %s1548_s28 }
 0x182   : > { %1143 = vmatprep.subr.bf16.mxu0 %v1292_v46 }
 0x183   : > { %v530_v8 = vadd.f32 %v522_v4, %v503_v63  ;;  %v523_v9 = vadd.f32 %v521_v5, %v502_v1 }
 0x185   : > { %1144 = vmatpush3.bf16.msra.mxu0 %v1293_v48  ;;  %v531_v11 = vrot.slane %v530_v8, 4  ;;  %v524_v12 = vrot.slane %v523_v9, 4  ;;  %823 = vrot.lane.b32.xlu1 %v1816_v6, %s1549_s29 }
 0x186   : > { %1145 = vmatprep.subr.bf16.mxu0 %v1294_v49 }
 0x187   : > { %v532_v14 = vadd.f32 %v531_v11, %v530_v8  ;;  %v525_v15 = vadd.f32 %v524_v12, %v523_v9 }
 0x189   : > { %1146 = vmatpush3.bf16.msra.mxu0 %v1295_v52  ;;  %v533_v16 = vrot.slane %v532_v14, 2  ;;  %v526_v17 = vrot.slane %v525_v15, 2  ;;  %805 = vrot.lane.b32.xlu1 %v1816_v6, %s1550_s13 }
 0x18a   : > { %1147 = vmatprep.subr.bf16.mxu0 %v1296_v53 }
 0x18b   : > { %v534_v18 = vadd.f32 %v533_v16, %v532_v14  ;;  %v527_v19 = vadd.f32 %v526_v17, %v525_v15 }
 0x18d   : > { %1148 = vmatpush3.bf16.msra.mxu0 %v1297_v62  ;;  %v535_v20 = vrot.slane %v534_v18, 1  ;;  %v528_v21 = vrot.slane %v527_v19, 1 }
 0x18e   : > { %1149 = vmatprep.subr.bf16.mxu0 %v1298_v3  ;;  %v594_v3 = vrot.slane %v509_v59, %v1806_v50 }
 0x18f   : > { %v536_v22 = vadd.f32 %v535_v20, %v534_v18  ;;  %v529_v23 = vadd.f32 %v528_v21, %v527_v19  ;;  %v643_v20 = vld [vmem:[#allocation11 + $0x3] ss:$0 sm:$0xff] }
 0x191   : > { %1150 = vmatpush3.bf16.msra.mxu0 %v1299_v7  ;;  %v538_v24 = vmul.f32 0.125, %v536_v22  ;;  %v537_v25 = vmul.f32 0.125, %v529_v23 }
 0x192   : > { %1151 = vmatprep.subr.bf16.mxu0 %v1300_v10 }
 0x193   : > { %v540_v26 = vsub.f32 %v503_v63, %v538_v24  ;;  %v542_v27 = vsub.f32 %v505_v0, %v538_v24  ;;  %v539_v28 = vsub.f32 %v502_v1, %v537_v25  ;;  %v541_v29 = vsub.f32 %v504_v2, %v537_v25 }
 0x194   : > { %v598_v1 = vrot.slane %v509_v59, %v1808_v51 }
 0x195   : > { %1152 = vmatpush3.bf16.msra.mxu0 %v1301_v13  ;;  %v546_v30 = vmul.f32 0.0, %v542_v27  ;;  %v548_v31 = vmul.f32 %v540_v26, %v540_v26  ;;  %v545_v32 = vmul.f32 0.0, %v541_v29  ;;  %v547_v33 = vmul.f32 %v539_v28, %v539_v28 }
 0x196   : > { %v579_v60 = vmul.f32 %v575_v57, %v540_v26  ;;  %v581_v62 = vmul.f32 %v575_v57, %v542_v27  ;;  %v578_v63 = vmul.f32 %v571_v58, %v539_v28  ;;  %v580_v0 = vmul.f32 %v571_v58, %v541_v29 }
 0x197   : > { %v550_v34 = vmul.f32 %v546_v30, %v546_v30  ;;  %v549_v35 = vmul.f32 %v545_v32, %v545_v32 }
 0x199   : > { %v558_v36 = vadd.f32 %v550_v34, %v548_v31  ;;  %v551_v37 = vadd.f32 %v549_v35, %v547_v33 }
 0x19b   : > { %v559_v38 = vrot.slane %v558_v36, 4  ;;  %v552_v39 = vrot.slane %v551_v37, 4 }
 0x19d   : > { %v560_v40 = vadd.f32 %v559_v38, %v558_v36  ;;  %v553_v41 = vadd.f32 %v552_v39, %v551_v37  ;;  %v912_v37 = vmul.f32 2.0, %v1812_v61  ;;  %v913_v38 = vmul.f32 2.0, %v1816_v6 }
 0x19f   : > { %v561_v42 = vrot.slane %v560_v40, 2  ;;  %v554_v43 = vrot.slane %v553_v41, 2 }
 0x1a1   : > { %v562_v44 = vadd.f32 %v561_v42, %v560_v40  ;;  %v555_v45 = vadd.f32 %v554_v43, %v553_v41 }
 0x1a3   : > { %v563_v46 = vrot.slane %v562_v44, 1  ;;  %v556_v47 = vrot.slane %v555_v45, 1 }
 0x1a5   : > { %v564_v48 = vadd.f32 %v563_v46, %v562_v44  ;;  %v557_v49 = vadd.f32 %v556_v47, %v555_v45 }
 0x1a7   : > { %v566_v52 = vmul.f32 0.125, %v564_v48  ;;  %v565_v53 = vmul.f32 0.125, %v557_v49 }
 0x1a9   : > { %v583_v54 = vadd.f32 0.001, %v566_v52  ;;  %v582_v55 = vadd.f32 0.001, %v565_v53 }
 0x1ab   : > { %1302 = vrsqrt.f32 %v583_v54 }
 0x1ac   : > { %1304 = vrsqrt.f32 %v582_v55 }
 0x1b8   : > { %v1303_v2 = vpop.eup %1302 }
 0x1b9   : > { %v1305_v4 = vpop.eup %1304  ;;  %v587_v5 = vmul.f32 %v1303_v2, %v579_v60  ;;  %v589_v7 = vmul.f32 %v1303_v2, %v581_v62 }
 0x1ba   : > { %v586_v8 = vmul.f32 %v1305_v4, %v578_v63  ;;  %v588_v9 = vmul.f32 %v1305_v4, %v580_v0 }
 0x1bb   : > { %v602_v10 = vadd.f32 %v598_v1, %v587_v5  ;;  %v604_v11 = vadd.f32 %v598_v1, %v589_v7 }
 0x1bc   : > { %v601_v12 = vadd.f32 %v594_v3, %v586_v8  ;;  %v603_v13 = vadd.f32 %v594_v3, %v588_v9 }
 0x1bd   : > { %v606_v14 = vmax.f32 %v602_v10, 0.0  ;;  %v608_v15 = vmax.f32 %v604_v11, 0.0 }
 0x1be   : > { %v605_v16 = vmax.f32 %v601_v12, 0.0  ;;  %v607_v17 = vmax.f32 %v603_v13, 0.0  ;;  %v1553_v12 = vmov 0.0  }
 0x1bf   : > { %v610_v18 = vpack.c.bf16 %v608_v15, %v606_v14  ;;  %944 = vst [vmem:[#allocation12] sm:$0xff] %v1553_v12  ;;  %945 = vst [vmem:[#allocation12 + $0x8] sm:$0xff] %v1553_v12 }
 0x1c0   : > { %v609_v19 = vpack.c.bf16 %v607_v17, %v605_v16 }
 0x1c1   : > { %772 = vmatprep.mubr.bf16.mxu0 %v610_v18 }
 0x1c2   : > { %773 = vmatmul.mubr.bf16.vlgmr.msra.gmra.mxu0 %v609_v19 }
 0x1ef   : > { %v893_v21 = vpop.permute.xlu1 %892 }
 0x1f3   : > { %v895_v28 = vpop.permute.xlu1 %894 }
 0x1f7   : > { %v824_v15 = vpop.permute.xlu1 %823 }
 0x1fb   : > { %v806_v19 = vpop.permute.xlu1 %805 }
 0x282   : > { %v1153_v51 = vpop.f32.mrf.mxu0 }
 0x284   : > { %v1154_v50 = vpop.f32.mrf.mxu0 }
 0x285   : > { %v1155_v22 = vadd.f32 %v1154_v50, %v1153_v51 }
 0x286   : > { %v1156_v23 = vpop.f32.mrf.mxu0 }
 0x287   : > { %v1828_v24 = vadd.f32 %v1155_v22, %v643_v20 }
 0x288   : > { %v1157_v25 = vpop.f32.mrf.mxu0 }
 0x289   : > { %v1158_v26 = vadd.f32 %v1157_v25, %v1156_v23  ;;  %v839_v27 = vmul.f32 %v1828_v24, %v1828_v24  ;;  %v898_v33 = vsub.f32 %v1828_v24, %v893_v21  ;;  %v781_v35 = vmul.f32 1.442695, %v1828_v24 }
 0x28b   : > { %v1832_v29 = vadd.f32 %v1158_v26, %v643_v20  ;;  %843 = vrot.lane.b32.xlu0 %v839_v27, %s1550_s13  ;;  %v900_v34 = vmul.f32 %v898_v33, %v898_v33  ;;  %1306 = vpow2.f32 %v781_v35 }
 0x28d   : > { %v899_v30 = vsub.f32 %v1832_v29, %v895_v28  ;;  %v840_v31 = vmul.f32 %v1832_v29, %v1832_v29  ;;  %v783_v36 = vmul.f32 1.442695, %v1832_v29 }
 0x28f   : > { %v901_v32 = vmul.f32 %v899_v30, %v899_v30  ;;  %845 = vrot.lane.b32.xlu0 %v840_v31, %s1550_s13  ;;  %1308 = vpow2.f32 %v783_v36 }
 0x290   : > { %1310 = vrcp.f32 %v912_v37 }
 0x291   : > { %906 = vrot.lane.b32.xlu1 %v901_v32, %s1551_s15  ;;  %1312 = vrcp.f32 %v913_v38 }
 0x293   : > { %821 = vrot.lane.b32.xlu0 %v1812_v61, %s1549_s29 }
 0x297   : > { %904 = vrot.lane.b32.xlu0 %v900_v34, %s1551_s15 }
 0x298   : > { %v1848_v39 = vpop.eup %1306 }
 0x299   : > { %1314 = vlog2.f32 %v1848_v39  ;;  %vm789_vm0 = vcmp.eq.f32.partialorder %v1848_v39, inf  ;;  %v792_v5 = vand.u32 2147483648, %v1848_v39  ;;  %vm791_vm2 = vcmp.eq.f32.partialorder %v1848_v39, 0.0 }
 0x29a   : > { %1316 = vrsqrt.f32 %v1848_v39 }
 0x29b   : > { %803 = vrot.lane.b32.xlu0 %v1812_v61, %s1550_s13 }
 0x29c   : > { %v1850_v40 = vpop.eup %1308 }
 0x29d   : > { %1318 = vrsqrt.f32 %v1850_v40  ;;  %v1311_v41 = vpop.eup %1310  ;;  %vm796_vm1 = vcmp.eq.f32.partialorder %v1850_v40, inf  ;;  %v799_v9 = vand.u32 2147483648, %v1850_v40  ;;  %vm798_vm3 = vcmp.eq.f32.partialorder %v1850_v40, 0.0 }
 0x29e   : > { %1320 = vlog2.f32 %v1850_v40  ;;  %v916_v42 = vmul.f32 %v1311_v41, %v912_v37  ;;  %v1313_v43 = vpop.eup %1312 }
 0x29f   : > { %v917_v54 = vmul.f32 %v1313_v43, %v913_v38  ;;  %1322 = vlog2.f32 %v1812_v61 }
 0x2a0   : > { %v918_v48 = vsub.f32 2.0, %v916_v42  ;;  %1324 = vlog2.f32 %v1816_v6 }
 0x2a1   : > { %v919_v1 = vsub.f32 2.0, %v917_v54 }
 0x2a2   : > { %v920_v60 = vmul.f32 %v1311_v41, %v918_v48 }
 0x2a3   : > { %v921_v8 = vmul.f32 %v1313_v43, %v919_v1 }
 0x2a6   : > { %v1315_v44 = vpop.eup %1314 }
 0x2a7   : > { %v1317_v47 = vpop.eup %1316  ;;  %v854_v53 = vmul.f32 0.6931472, %v1315_v44 }
 0x2a8   : > { %v788_v59 = vmul.f32 %v1317_v47, %v1848_v39 }
 0x2aa   : > { %v1319_v49 = vpop.eup %1318  ;;  %v790_v4 = vsel %vm789_vm0, %v1848_v39, %v788_v59 }
 0x2ab   : > { %v1321_v55 = vpop.eup %1320  ;;  %v795_v62 = vmul.f32 %v1319_v49, %v1850_v40  ;;  %v793_v10 = vsel %vm791_vm2, %v792_v5, %v790_v4 }
 0x2ac   : > { %v856_v63 = vmul.f32 0.6931472, %v1321_v55  ;;  %v1323_v42 = vpop.eup %1322 }
 0x2ad   : > { %v797_v7 = vsel %vm796_vm1, %v1850_v40, %v795_v62  ;;  %v877_v43 = vmul.f32 0.6931472, %v1323_v42 }
 0x2ae   : > { %v800_v14 = vsel %vm798_vm3, %v799_v9, %v797_v7 }
 0x2af   : > { %v828_v16 = vmul.f32 %v824_v15, %v800_v14  ;;  %v810_v51 = vmul.f32 %v806_v19, %v800_v14 }
 0x2fd   : > { %v844_v45 = vpop.permute.xlu0 %843 }
 0x2fe   : > { %v849_v46 = vadd.f32 %v1848_v39, %v844_v45 }
 0x300   : > { %v1127_v52 = vadd.f32 -1.0, %v849_v46  ;;  %v1325_v46 = vpop.eup %1324 }
 0x301   : > { %v846_v56 = vpop.permute.xlu0 %845  ;;  %v879_v48 = vmul.f32 0.6931472, %v1325_v46 }
 0x302   : > { %v857_v57 = vsub.f32 %v1127_v52, %v854_v53  ;;  %v850_v58 = vadd.f32 %v1850_v40, %v846_v56 }
 0x303   : > { %v907_v20 = vpop.permute.xlu1 %906 }
 0x304   : > { %v1128_v0 = vadd.f32 -1.0, %v850_v58  ;;  %861 = vrot.lane.b32.xlu0 %v857_v57, %s1552_s24  ;;  %v911_v26 = vadd.f32 %v1850_v40, %v907_v20 }
 0x305   : > { %v822_v2 = vpop.permute.xlu0 %821 }
 0x306   : > { %v858_v3 = vsub.f32 %v1128_v0, %v856_v63  ;;  %v827_v13 = vmul.f32 %v822_v2, %v793_v10 }
 0x308   : > { %863 = vrot.lane.b32.xlu1 %v858_v3, %s1552_s24  ;;  %924 = vrot.lane.b32.xlu0 %v920_v60, %s1548_s28 }
 0x309   : > { %v905_v11 = vpop.permute.xlu0 %904 }
 0x30a   : > { %v910_v21 = vadd.f32 %v1848_v39, %v905_v11 }
 0x30c   : > { %926 = vrot.lane.b32.xlu1 %v921_v8, %s1548_s28  ;;  %831 = vrot.lane.b32.xlu0 %v827_v13, %s1554_s27 }
 0x30d   : > { %v804_v17 = vpop.permute.xlu0 %803 }
 0x30e   : > { %v809_v18 = vmul.f32 %v804_v17, %v793_v10 }
 0x310   : > { %833 = vrot.lane.b32.xlu1 %v828_v16, %s1554_s27  ;;  %882 = vrot.lane.b32.xlu0 %v854_v53, %s1555_s16 }
 0x314   : > { %884 = vrot.lane.b32.xlu1 %v856_v63, %s1555_s16  ;;  %813 = vrot.lane.b32.xlu0 %v809_v18, %s1552_s24 }
 0x318   : > { %815 = vrot.lane.b32.xlu1 %v810_v51, %s1552_s24 }
 0x376   : > { %v862_v50 = vpop.permute.xlu0 %861 }
 0x377   : > { %v868_v38 = vsel %vm867_vm4, %v862_v50, 0.0 }
 0x37a   : > { %v864_v22 = vpop.permute.xlu1 %863  ;;  %v925_v23 = vpop.permute.xlu0 %924 }
 0x37b   : > { %v930_v25 = vmul.f32 %v925_v23, %v910_v21  ;;  %v871_v39 = vsel %vm867_vm4, %v864_v22, 0.0 }
 0x37d   : > { %934 = vrot.lane.b32.xlu0 %v930_v25, %s1555_s16 }
 0x37e   : > { %v927_v27 = vpop.permute.xlu1 %926  ;;  %v832_v28 = vpop.permute.xlu0 %831 }
 0x37f   : > { %v931_v30 = vmul.f32 %v927_v27, %v911_v26  ;;  %v837_v40 = vadd.f32 %v832_v28, %v1828_v24 }
 0x381   : > { %936 = vrot.lane.b32.xlu1 %v931_v30, %s1555_s16 }
 0x382   : > { %v834_v31 = vpop.permute.xlu1 %833  ;;  %v883_v32 = vpop.permute.xlu0 %882 }
 0x383   : > { %v838_v41 = vadd.f32 %v834_v31, %v1832_v29  ;;  %v888_v44 = vsub.f32 %v877_v43, %v883_v32 }
 0x385   : > { %v890_v47 = vmul.f32 0.5, %v888_v44 }
 0x386   : > { %v885_v33 = vpop.permute.xlu1 %884  ;;  %v814_v34 = vpop.permute.xlu0 %813 }
 0x387   : > { %v819_v35 = vadd.f32 %v814_v34, %v1828_v24  ;;  %v889_v24 = vsub.f32 %v879_v48, %v885_v33 }
 0x389   : > { %946 = vst.msk [vmem:[#allocation12] sm:$0xff] %vm867_vm4, %v819_v35  ;;  %v891_v61 = vmul.f32 0.5, %v889_v24 }
 0x38a   : > { %v816_v36 = vpop.permute.xlu1 %815 }
 0x38b   : > { %v820_v37 = vadd.f32 %v816_v36, %v1832_v29 }
 0x38d   : > { %947 = vst.msk [vmem:[#allocation12 + $0x8] sm:$0xff] %vm867_vm4, %v820_v37 }
 0x39c   : > { %869 = vadd.xlane.f32.xlu0 %v868_v38 }
 0x3a5   : > { %872 = vadd.xlane.f32.xlu1 %v871_v39 }
 0x3b2   : > { %950 = vrot.lane.b32.xlu0 %v837_v40, %s1552_s24 }
 0x3b6   : > { %952 = vrot.lane.b32.xlu1 %v838_v41, %s1552_s24 }
 0x3ef   : > { %v935_v45 = vpop.permute.xlu0 %934 }
 0x3f0   : > { %v940_v52 = vadd.f32 %v935_v45, %v890_v47 }
 0x3f2   : > { %v1129_v54 = vadd.f32 -0.5, %v940_v52 }
 0x3f3   : > { %v937_v55 = vpop.permute.xlu1 %936 }
 0x3f4   : > { %v941_v56 = vadd.f32 %v937_v55, %v891_v61 }
 0x3f6   : > { %v1130_v59 = vadd.f32 -0.5, %v941_v56 }
 0x425   : > { %v870_v49 = vpop.xlane.xlu0 %869 }
 0x426   : > { %v874_v53 = vmul.f32 0.5, %v870_v49 }
 0x429   : > { %v951_v29 = vpop.permute.xlu0 %950 }
 0x42a   : > { %957 = vst.msk [vmem:[#allocation12] sm:$0xff] %vm956_vm5, %v951_v29 }
 0x42b   : > { %960 = vst.msk [vmem:[#allocation12] sm:$0xff] %vm959_vm6, %v874_v53 }
 0x42c   : > { %963 = vst.msk [vmem:[#allocation12] sm:$0xff] %vm962_vm7, %v1129_v54 }
 0x42e   : > { %v873_v6 = vpop.xlane.xlu1 %872 }
 0x42f   : > { %v875_v57 = vmul.f32 0.5, %v873_v6 }
 0x432   : > { %v953_v58 = vpop.permute.xlu1 %952 }
 0x433   : > { %958 = vst.msk [vmem:[#allocation12 + $0x8] sm:$0xff] %vm956_vm5, %v953_v58 }
 0x434   : > { %961 = vst.msk [vmem:[#allocation12 + $0x8] sm:$0xff] %vm959_vm6, %v875_v57 }
 0x435   : > { %964 = vst.msk [vmem:[#allocation12 + $0x8] sm:$0xff] %vm962_vm7, %v1130_v59 }
 0x436 PF: > { %p1203_p5 = scmp.eq.s32.totalorder %s1608_s22, 1  ;;  %s1556_s25 = smov [#allocation12]  }
 0x437   : > { %s971_s7 = sshll.u32 %s1556_s25, 4  ;;  %s972_s7 = int_to_ptr.vmem [resolvable:$true] %s971_s7 }
 0x438   : > { %s1460_s30 = scalar_lea.vmem %s972_s7, 256  ;;  %p1467_p8 = scmp.lt.s32.totalorder %s972_s7, %s972_s7 }
 0x439   : > { %p1461_p1 = scmp.ne.s32.totalorder %s972_s7, %s1460_s30  ;;  %p1468_p6 = scmp.lt.s32.totalorder %s1460_s30, %s1460_s30 }
 0x43b   : > { %p1462_p12 = pnand %p1461_p1, %p1203_p5  ;;  %p1469_p4 = por %p1468_p6, %p1467_p8 }
 0x43d   : > { %p1463_p7 = pneg %p1462_p12 }
 0x43f   : > { %p1470_p3 = pnand %p1469_p4, %p1463_p7 }
 0x441   : > { %1473 = shalt.err (!%p1470_p3)
}
 0x442   : > { %s1557_s6 = smov 128   ;;  %s1558_s10 = smov 8  }
 0x443   : > { %1176 = dma.vmem_to_hbm [thread:$0]  (%p1203_p5), %s972_s7, 256, %s1918_s5, [#allocation5], %s1557_s6, %s1557_s6, %s1558_s10  }
 0x444   : > { %1517 = dma.done.wait (%p1203_p5), [#allocation5], 256  }
 0x445   : > { %1519 = vsyncadd (%p1203_p5), [#allocation5], 4294967040 }
 0x446 PF: > { %p20_p10 = scmp.ge.s32.totalorder %s1611_s23, 4   ;;  %s1934_s18 = smov %s1526_s19 }
 0x447   : > { %s1935_s19 = smov %s1530_s20  ;;  %s1936_s20 = smov %s1621_s26 }
 0x448   : > { %s1937_s21 = smov %s1611_s23  ;;  %22 = sbr.rel (!%p20_p10) target bundleno = 9 (0x9), region = 112 }
 0x44d   :  { %987 = vsyncpa [#allocation4], 1 }
 0x44e   :  { %989 = vsyncpa [#allocation4 + $0x1], 1 }
 0x44f   :  { %990 = vsyncpa [#allocation7], 1 }
 0x450   :  { %992 = vsyncpa [#allocation7 + $0x1], 1 }
 0x451   :  { %993 = vsyncpa [#allocation10], 1 }
 0x452   :  { %994 = vsyncpa [#allocation5], 1 }
 0x453   :  { %996 = vsyncpa [#allocation5 + $0x1], 1 }

</bundles_post_ra>
